<compile_context>
chip_gen: v6e
topology: v6e:2x2x1
jax: 0.10.0
libtpu: 0.0.40
codegen_flags: <defaults>
</compile_context>

<pallas_src>
import functools

import jax
import jax.numpy as jnp
from jax import lax
from jax.experimental import pallas as pl
from jax.experimental.pallas import tpu as pltpu


def _feat2emb_kernel(x_ref, w_ref, b_ref, o_ref, acc_ref, *, inv_t):
    """One (chunk, batch-tile) program; grid axis 2 reduces over time tiles.

    x_ref:   (B_TILE, T_TILE, D_in)  current time-slab of this chunk
    w_ref:   (D_out, D_in)           this chunk's Linear weight (resident over k)
    b_ref:   (1, D_out)              this chunk's Linear bias
    o_ref:   (B_TILE, D_out)         output tile (written at the last k step)
    acc_ref: (B_TILE, D_in) f32      running time-sum accumulator (VMEM scratch)
    """
    k = pl.program_id(2)

    @pl.when(k == 0)
    def _init():
        acc_ref[...] = jnp.zeros_like(acc_ref)

    # Raw sum over this time tile; the 1/T_c scale is applied once at finalize.
    x = x_ref[...].astype(jnp.float32)
    acc_ref[...] += jnp.sum(x, axis=1)

    @pl.when(k == pl.num_programs(2) - 1)
    def _finalize():
        m = acc_ref[...] * inv_t                                  # mean over time
        w = w_ref[...].astype(jnp.float32)                        # (D_out, D_in)
        # Contract on the shared D_in axis directly -- no in-kernel w.T copy.
        y = lax.dot_general(
            m, w,
            dimension_numbers=(((1,), (1,)), ((), ())),
            preferred_element_type=jnp.float32)                   # (B_TILE, D_out)
        y = y + b_ref[...]                                        # bias broadcast
        sumsq = jnp.sum(y * y, axis=1, keepdims=True)
        o_ref[...] = (y * lax.rsqrt(sumsq + 1e-12)).astype(o_ref.dtype)


def _pick_tile(total, limit, full_ok):
    """Largest divisor of `total` that is <= limit and either a multiple of 8
    (TPU sublane tiling) or, if full_ok, equal to `total`.  Falls back to the
    largest divisor <= limit."""
    best, best_any = None, 1
    for cand in range(1, total + 1):
        if total % cand or cand > limit:
            continue
        best_any = cand
        if cand % 8 == 0 or (full_ok and cand == total):
            best = cand
    return best if best is not None else best_any


def feat2emb_forward(feats, weights, biases, chunk=1, c=True,
                     t_tile=None, b_tile=None):
    """Pallas implementation of Feat2Emb.forward.

    feats:   (B, T, D_in)
    weights: (chunk, D_out, D_in)
    biases:  (chunk, D_out)
    Returns a list of `chunk` arrays, each (B, D_out), matching PyTorch.
    """
    B, T, D_in = feats.shape
    n_chunk, D_out, _ = weights.shape
    assert n_chunk == chunk

    if chunk > 1:
        if not c:
            # TODO(synk): c=False path expects a python list of per-chunk tensors.
            raise NotImplementedError
        assert feats.ndim == 3 and T % chunk == 0
    T_c = T // chunk

    itemsize = jnp.dtype(feats.dtype).itemsize

    # Batch tile: multiple of 8 (or all of B) so the output block stays
    # (8,128)-friendly; also gives v7x a parallel axis to shard across cores.
    if b_tile is None:
        b_tile = _pick_tile(B, min(B, 256), full_ok=True)
    assert B % b_tile == 0

    # Time tile: largest divisor of T_c keeping one x buffer under ~8 MiB so
    # the double-buffered stream + weights + scratch stay far below the VMEM
    # budget on every chip generation (incl. v7x's 64 MiB).
    if t_tile is None:
        budget_rows = max(1, (8 * 1024 * 1024) // max(1, b_tile * D_in * itemsize))
        t_tile = _pick_tile(T_c, min(T_c, budget_rows), full_ok=(chunk == 1))
    assert T_c % t_tile == 0
    n_k = T_c // t_tile

    b2d = biases.reshape(chunk, 1, D_out)
    kernel = functools.partial(_feat2emb_kernel, inv_t=1.0 / T_c)

    out = pl.pallas_call(
        kernel,
        out_shape=jax.ShapeDtypeStruct((chunk, B, D_out), jnp.float32),
        grid_spec=pltpu.PrefetchScalarGridSpec(
            num_scalar_prefetch=0,
            grid=(chunk, B // b_tile, n_k),
            in_specs=[
                # Chunk i, batch tile b, time tile k sliced directly from the
                # original (B, T, D_in) layout -- no host transpose copy.
                pl.BlockSpec((b_tile, t_tile, D_in),
                             lambda i, b, k: (b, i * n_k + k, 0)),
                pl.BlockSpec((None, D_out, D_in), lambda i, b, k: (i, 0, 0)),
                pl.BlockSpec((None, 1, D_out), lambda i, b, k: (i, 0, 0)),
            ],
            out_specs=pl.BlockSpec((None, b_tile, D_out),
                                   lambda i, b, k: (i, b, 0)),
            scratch_shapes=[pltpu.VMEM((b_tile, D_in), jnp.float32)],
        ),
        compiler_params=pltpu.CompilerParams(
            dimension_semantics=("parallel", "parallel", "arbitrary"),
            vmem_limit_bytes=48 * 1024 * 1024,
        ),
    )(feats, weights, b2d)

    return [out[i] for i in range(chunk)]


def _init_params(key, chunk, in_size, out_size):
    """Deterministic parameter init mirroring the module's __init__ shapes."""
    kw, kb = jax.random.split(key)
    std = (2.0 / (in_size + out_size)) ** 0.5
    weights = std * jax.random.normal(kw, (chunk, out_size, in_size), dtype=jnp.float32)
    bound = 1.0 / (in_size ** 0.5)
    biases = jax.random.uniform(
        kb, (chunk, out_size), minval=-bound, maxval=bound, dtype=jnp.float32
    )
    return weights, biases


def _reference(feats, weights, biases, chunk, c=True):
    """Pure-JAX reference of the PyTorch forward (for correctness check)."""
    B, T, D_in = feats.shape
    if chunk > 1 and c:
        T_c = T // chunk
        parts = [feats[:, i * T_c:(i + 1) * T_c, :].mean(axis=1) for i in range(chunk)]
    else:
        parts = [feats.mean(axis=1)]
    outs = []
    for i in range(chunk):
        y = parts[i] @ weights[i].T + biases[i]
        norm = jnp.sqrt(jnp.sum(y * y, axis=1, keepdims=True))
        outs.append(y / norm)
    return outs


if __name__ == "__main__":
    key = jax.random.PRNGKey(0)
    k_feat, k_par = jax.random.split(key)

    B, T, D_in, D_out, CHUNK = 8, 32, 32, 32, 2

    feats = jax.random.normal(k_feat, (B, T, D_in), dtype=jnp.float32)
    weights, biases = _init_params(k_par, CHUNK, D_in, D_out)

    # t_tile=8 -> 2 pipelined reduction steps per chunk (exercises the accumulator).
    outs = feat2emb_forward(feats, weights, biases, chunk=CHUNK, c=True, t_tile=8)
    outs = [jax.block_until_ready(o) for o in outs]

    refs = _reference(feats, weights, biases, CHUNK, c=True)
    for o, r in zip(outs, refs):
        assert o.shape == (B, D_out)
        assert jnp.allclose(o, r, atol=1e-5, rtol=1e-5)

    print("KERNEL_OK")
</pallas_src>

<mosaic_0001>
module attributes {stable_mosaic.version = 11 : i64} {
  func.func @_feat2emb_kernel(%arg0: i32, %arg1: i32, %arg2: i32, %arg3: memref<8x8x32xf32, #tpu.memory_space<vmem>>, %arg4: memref<1x32x32xf32, #tpu.memory_space<vmem>>, %arg5: memref<1x1x32xf32, #tpu.memory_space<vmem>>, %arg6: memref<1x8x32xf32, #tpu.memory_space<vmem>>, %arg7: memref<8x32xf32, #tpu.memory_space<vmem>>) attributes {dimension_semantics = [#tpu.dimension_semantics<parallel>, #tpu.dimension_semantics<parallel>, #tpu.dimension_semantics<arbitrary>], iteration_bounds = array<i64: 2, 1, 2>, scalar_prefetch = 0 : i64, scratch_operands = 1 : i64, tpu.core_type = #tpu.core_type<tc>, window_params = [{transform_indices = @transform_0, window_bounds = array<i64: 8, 8, 32>}, {transform_indices = @transform_1, window_bounds = array<i64: 1, 32, 32>}, {transform_indices = @transform_2, window_bounds = array<i64: 1, 1, 32>}, {transform_indices = @transform_3, window_bounds = array<i64: 1, 8, 32>}]} {
    %c0_i32 = arith.constant 0 : i32
    %0 = arith.cmpi eq, %arg2, %c0_i32 : i32
    %1 = arith.extui %0 : i1 to i32
    %c0_i32_0 = arith.constant 0 : i32
    %2 = arith.cmpi ne, %1, %c0_i32_0 : i32
    scf.if %2 {
      %cst_8 = arith.constant 0.000000e+00 : f32
      %11 = vector.broadcast %cst_8 : f32 to vector<8x32xf32>
      %c0_9 = arith.constant 0 : index
      %c0_10 = arith.constant 0 : index
      %12 = vector.load %arg7[%c0_9, %c0_10] : memref<8x32xf32, #tpu.memory_space<vmem>>, vector<8x32xf32>
      tpu.vector_store %arg7[%c0_9, %c0_10], %11 {strides = array<i32>} : memref<8x32xf32, #tpu.memory_space<vmem>>, vector<8x32xf32>,
    } else {
    }
    %c0 = arith.constant 0 : index
    %c0_1 = arith.constant 0 : index
    %c0_2 = arith.constant 0 : index
    %3 = vector.load %arg3[%c0, %c0_1, %c0_2] : memref<8x8x32xf32, #tpu.memory_space<vmem>>, vector<8x8x32xf32>
    %c0_3 = arith.constant 0 : index
    %c0_4 = arith.constant 0 : index
    %4 = vector.load %arg7[%c0_3, %c0_4] : memref<8x32xf32, #tpu.memory_space<vmem>>, vector<8x32xf32>
    %cst = arith.constant dense<0.000000e+00> : vector<8x32xf32>
    %5 = vector.multi_reduction <add>, %3, %cst [1] : vector<8x8x32xf32> to vector<8x32xf32>
    %6 = arith.addf %4, %5 : vector<8x32xf32>
    %c0_5 = arith.constant 0 : index
    %c0_6 = arith.constant 0 : index
    %7 = vector.load %arg7[%c0_5, %c0_6] : memref<8x32xf32, #tpu.memory_space<vmem>>, vector<8x32xf32>
    tpu.vector_store %arg7[%c0_5, %c0_6], %6 {strides = array<i32>} : memref<8x32xf32, #tpu.memory_space<vmem>>, vector<8x32xf32>,
    %c1_i32 = arith.constant 1 : i32
    %8 = arith.cmpi eq, %arg2, %c1_i32 : i32
    %9 = arith.extui %8 : i1 to i32
    %c0_i32_7 = arith.constant 0 : i32
    %10 = arith.cmpi ne, %9, %c0_i32_7 : i32
    scf.if %10 {
      %c0_8 = arith.constant 0 : index
      %c0_9 = arith.constant 0 : index
      %11 = vector.load %arg7[%c0_8, %c0_9] : memref<8x32xf32, #tpu.memory_space<vmem>>, vector<8x32xf32>
      %cst_10 = arith.constant 6.250000e-02 : f32
      %12 = vector.broadcast %cst_10 : f32 to vector<8x32xf32>
      %13 = arith.mulf %11, %12 : vector<8x32xf32>
      %c0_11 = arith.constant 0 : index
      %c0_12 = arith.constant 0 : index
      %c0_13 = arith.constant 0 : index
      %14 = vector.load %arg4[%c0_11, %c0_12, %c0_13] : memref<1x32x32xf32, #tpu.memory_space<vmem>>, vector<1x32x32xf32>
      %15 = vector.shape_cast %14 : vector<1x32x32xf32> to vector<32x32xf32>
      %cst_14 = arith.constant dense<0.000000e+00> : vector<8x32xf32>
      %16 = tpu.matmul %13, %15, %cst_14 {dimension_numbers = #tpu.dot_dimension_numbers<[1], [1], [0], [0], [0, 0, 1, 0], [], []>} : vector<8x32xf32>, vector<32x32xf32>, vector<8x32xf32> -> vector<8x32xf32>
      %c0_15 = arith.constant 0 : index
      %c0_16 = arith.constant 0 : index
      %c0_17 = arith.constant 0 : index
      %17 = vector.load %arg5[%c0_15, %c0_16, %c0_17] : memref<1x1x32xf32, #tpu.memory_space<vmem>>, vector<1x1x32xf32>
      %18 = vector.shape_cast %17 : vector<1x1x32xf32> to vector<1x32xf32>
      %19 = vector.broadcast %18 : vector<1x32xf32> to vector<8x32xf32>
      %20 = arith.addf %16, %19 : vector<8x32xf32>
      %21 = arith.mulf %20, %20 : vector<8x32xf32>
      %cst_18 = arith.constant dense<0.000000e+00> : vector<8xf32>
      %22 = vector.multi_reduction <add>, %21, %cst_18 [1] : vector<8x32xf32> to vector<8xf32>
      %23 = vector.shape_cast %22 : vector<8xf32> to vector<8x1xf32>
      %cst_19 = arith.constant 9.99999996E-13 : f32
      %24 = vector.broadcast %cst_19 : f32 to vector<8x1xf32>
      %25 = arith.addf %23, %24 : vector<8x1xf32>
      %26 = math.rsqrt %25 : vector<8x1xf32>
      %27 = vector.broadcast %26 : vector<8x1xf32> to vector<8x32xf32>
      %28 = arith.mulf %20, %27 : vector<8x32xf32>
      %c0_20 = arith.constant 0 : index
      %c0_21 = arith.constant 0 : index
      %c0_22 = arith.constant 0 : index
      %29 = vector.load %arg6[%c0_20, %c0_21, %c0_22] : memref<1x8x32xf32, #tpu.memory_space<vmem>>, vector<1x8x32xf32>
      %30 = vector.shape_cast %29 : vector<1x8x32xf32> to vector<8x32xf32>
      %31 = vector.shape_cast %28 : vector<8x32xf32> to vector<1x8x32xf32>
      tpu.vector_store %arg6[%c0_20, %c0_21, %c0_22], %31 {strides = array<i32>} : memref<1x8x32xf32, #tpu.memory_space<vmem>>, vector<1x8x32xf32>,
    } else {
    }
    return
  }
  func.func @transform_0(%arg0: i32, %arg1: i32, %arg2: i32) -> (i32, i32, i32) {
    %c2_i32 = arith.constant 2 : i32
    %0 = arith.muli %arg0, %c2_i32 : i32
    %1 = arith.addi %0, %arg2 : i32
    %c0_i32 = arith.constant 0 : i32
    %c0_i32_0 = arith.constant 0 : i32
    return %arg1, %1, %c0_i32 : i32, i32, i32
  }
  func.func @transform_1(%arg0: i32, %arg1: i32, %arg2: i32) -> (i32, i32, i32) {
    %c0_i32 = arith.constant 0 : i32
    %c0_i32_0 = arith.constant 0 : i32
    %c0_i32_1 = arith.constant 0 : i32
    return %arg0, %c0_i32, %c0_i32_0 : i32, i32, i32
  }
  func.func @transform_2(%arg0: i32, %arg1: i32, %arg2: i32) -> (i32, i32, i32) {
    %c0_i32 = arith.constant 0 : i32
    %c0_i32_0 = arith.constant 0 : i32
    %c0_i32_1 = arith.constant 0 : i32
    return %arg0, %c0_i32, %c0_i32_0 : i32, i32, i32
  }
  func.func @transform_3(%arg0: i32, %arg1: i32, %arg2: i32) -> (i32, i32, i32) {
    %c0_i32 = arith.constant 0 : i32
    %c0_i32_0 = arith.constant 0 : i32
    return %arg0, %arg1, %c0_i32 : i32, i32, i32
  }
}

</mosaic_0001>

<bundles_post_ra>
// kernel: tpu_custom_call.1
= control target key start
LH: loop header
LB: loop body
LE: loop exit
PB: predicated region body
PF: predicated region fallthrough
CT: control target
= control target key end

     0   :  { %s1278_s0 = inlined_call_operand.hbm [shape: f32[8,32,32], index: 0, kind: input, shape index: {}]   ;;  %s1279_s1 = inlined_call_operand.hbm [shape: f32[2,32,32], index: 1, kind: input, shape index: {}]   ;;  %s1280_s2 = inlined_call_operand.vmem [shape: f32[2,1,32], index: 2, kind: input, shape index: {}]   ;;  %s1281_s3 = inlined_call_operand.hbm [shape: f32[2,8,32], index: 3, kind: output, shape index: {}]  }
   0x1   :  { %1287 = sst [smem:[#allocation15_spill]] %s1278_s0 }
   0x2   :  { %1288 = sst [smem:[#allocation16_spill]] %s1281_s3 }
   0x3   :  { %8 = vsyncpa [#allocation4], 0 }
   0x4   :  { %10 = vsyncpa [#allocation4 + $0x1], 0 }
   0x5   :  { %11 = vsyncpa [#allocation7], 0 }
   0x6   :  { %13 = vsyncpa [#allocation7 + $0x1], 0 }
   0x7   :  { %14 = vsyncpa [#allocation5], 0 }
   0x8   :  { %16 = vsyncpa [#allocation5 + $0x1], 0  ;;  %s991_s12 = smov 0   ;;  %s993_s13 = smov 0  }
   0x9   :  { %s995_s14 = smov 0   ;;  %s997_s15 = smov 0  }
   0xa   :  { %s999_s16 = smov 0   ;;  %s1001_s17 = smov 0  }
   0xb   :  { %s1003_s18 = smov 0   ;;  %s1005_s19 = smov 0  }
   0xc   :  { %s1007_s20 = smov 0   ;;  %s1009_s21 = smov 0  }
   0xd   :  { %s1011_s22 = smov 0  }
   0xe LB: > { %1289 = sst [smem:[#allocation12_spill]] %s944_s18  ;;  %s34_s23 = sadd.s32 1, %s952_s20  ;;  %s960_s22 = sphi %s1011_s22, %s22_s22   ;;  %s956_s21 = sphi %s1009_s21, %s1319_s21   ;;  %s952_s20 = sphi %s1007_s20, %s1318_s20   ;;  %s948_s19 = sphi %s1005_s19, %s1317_s19   ;;  %s944_s18 = sphi %s1003_s18, %s1316_s18   ;;  %s940_s17 = sphi %s1001_s17, %s1315_s17   ;;  %s936_s16 = sphi %s999_s16, %s1314_s16   ;;  %s932_s15 = sphi %s997_s15, %s1313_s15   ;;  %s928_s14 = sphi %s995_s14, %s1312_s14   ;;  %s924_s13 = sphi %s993_s13, %s1311_s13   ;;  %s920_s12 = sphi %s991_s12, %s1310_s12  }
   0xf   : > { %1290 = sst [smem:[#allocation13_spill]] %s952_s20  ;;  %s41_s24 = sadd.s32 1, %s956_s21 }
  0x10   : > { %p35_p0 = scmp.ge.s32.totalorder %s34_s23, 2  ;;  %s622_s25 = sshll.u32 %s956_s21, 1 }
  0x11   : > { %s46_s26 = sadd.s32 %s952_s20, %s622_s25  ;;  %s54_s27 = sadd.s32 1, %s940_s17 }
  0x12   : > { %s1321_s23 = smov (%p35_p0, %s34_s23), 0  ;;  %s1323_s24 = smov (!%p35_p0, %s41_s24), %s956_s21 }
  0x13   : > { %p61_p1 = scmp.ne.s32.totalorder %s940_s17, %s936_s16  ;;  %p62_p2 = scmp.eq.s32.totalorder %s960_s22, 0 }
  0x14   : > { %p43_p3 = scmp.ge.s32.totalorder %s1323_s24, 2  ;;  %p67_p4 = scmp.ne.s32.totalorder %s936_s16, %s932_s15 }
  0x15   : > { %p1061_p5 = por %p62_p2, %p61_p1  ;;  %p682_p6 = scmp.lt.s32.totalorder %s960_s22, 4 }
  0x16   : > { %s1325_s24 = smov (%p43_p3, %s1323_s24), 0  ;;  %s171_s29 = sand.u32 1, %s940_s17  }
  0x17   : > { %1292 = sst [smem:[#allocation14_spill]] %s1325_s24  ;;  %s623_s30 = sshll.u32 %s1325_s24, 1 }
  0x18   : > { %s77_s4 = ssub.s32 %s956_s21, %s1325_s24  ;;  %s48_s5 = sadd.s32 %s623_s30, %s1321_s23 }
  0x19   : > { %p1073_p7 = scmp.eq.s32.totalorder %s77_s4, 0  ;;  %s50_s7 = ssub.s32 %s46_s26, %s48_s5 }
  0x1a   : > { %p52_p8 = scmp.eq.s32.totalorder %s50_s7, 0  ;;  %s626_s8 = sshll.u32 %s171_s29, 6 }
  0x1b   : > { %s628_s9 = sshll.u32 %s46_s26, 7  ;;  %s1294_s0 = sld [smem:[#allocation15_spill]] }
  0x1c   : > { %s1078_s10 = scalar_select %p52_p8, %s940_s17, %s54_s27  }
  0x1d   : > { %s175_s3 = scalar_lea.vmem [#allocation3], %s626_s8  ;;  %p1087_p9 = pnand %p682_p6, %p1061_p5 }
  0x1e   : > { %s186_s18 = sshll.u32 %s175_s3, 4  ;;  %s172_s4 = scalar_lea.sflag [#allocation4], %s171_s29  ;;  %s187_s18 = int_to_ptr.vmem [resolvable:$true] %s186_s18 }
  0x1f   : > { %p782_p10 = pneg %p1087_p9  ;;  %s793_s26 = scalar_lea.vmem %s187_s18, 1024 }
  0x20   : > { %p794_p11 = scmp.ne.s32.totalorder %s187_s18, %s793_s26  ;;  %s962_s27 = smov [#allocation3]  }
  0x21   : > { %s185_s20 = scalar_lea.hbm %s1294_s0, %s628_s9  ;;  %s798_s5 = sshll.u32 %s962_s27, 4  ;;  %s799_s5 = int_to_ptr.vmem [resolvable:$false] %s798_s5 }
  0x22   : > { %p796_p12 = pnand %p794_p11, %p782_p10  ;;  %s800_s7 = scalar_lea.vmem %s799_s5, 2048 }
  0x23   : > { %p801_p0 = scmp.lt.s32.totalorder %s187_s18, %s799_s5  ;;  %p802_p1 = scmp.lt.s32.totalorder %s800_s7, %s793_s26 }
  0x24   : > { %p797_p13 = pneg %p796_p12 }
  0x25   : > { %p803_p3 = por %p802_p1, %p801_p0 }
  0x27   : > { %p804_p8 = pnand %p803_p3, %p797_p13 }
  0x29   : > { %807 = shalt.err (!%p804_p8)
}
  0x2a   : > { %s963_s3 = smov 512   ;;  %s1284_s28 = smov 128  }
  0x2b   : > { %s1285_s29 = smov 8   ;;  %p632_p5 = scmp.ge.s32.totalorder %s960_s22, 1 }
  0x2c   : > { %674 = dma.hbm_to_vmem [thread:$0]  (!%p1087_p9), %s185_s20, 1024, %s187_s18, %s172_s4, %s963_s3, %s1284_s28, %s1285_s29  }
  0x2d   : > { %p221_p10 = scmp.lt.s32.totalorder %s960_s22, 5  ;;  %s620_s9 = sadd.s32 4294967295, %s960_s22  }
  0x2e   : > { %s621_s11 = sadd.s32 4294967294, %s960_s22   ;;  %p68_p12 = scmp.eq.s32.totalorder %s620_s9, 0 }
  0x2f   : > { %p1099_p11 = pnand %p632_p5, %p221_p10  ;;  %s80_s25 = sadd.s32 1, %s928_s14 }
  0x30   : > { %p87_p13 = scmp.ne.s32.totalorder %s928_s14, %s924_s13  ;;  %p1111_p0 = por %p68_p12, %p67_p4 }
  0x31   : > { %p93_p9 = scmp.ne.s32.totalorder %s924_s13, %s920_s12  ;;  %p145_p8 = scmp.eq.s32.totalorder %s620_s9, 3 }
  0x32   : > { %s1120_s18 = scalar_select %p1073_p7, %s928_s14, %s80_s25  }
  0x33   : > { %p89_p1 = por %p87_p13, %p62_p2  ;;  %p1124_p3 = por %p93_p9, %p68_p12 }
  0x34   : > { %p151_p5 = scmp.eq.s32.totalorder %s621_s11, 3  ;;  %s196_s4 = sand.u32 1, %s928_s14  }
  0x35   : > { %s648_s26 = sshll.u32 %s956_s21, 9  ;;  %p1130_p10 = por %p145_p8, %p87_p13 }
  0x36   : > { %p1134_p4 = por %p151_p5, %p93_p9  ;;  %s629_s6 = sshll.u32 %s196_s4, 5 }
  0x37   : > { %s206_s3 = scalar_lea.hbm %s1279_s1, %s648_s26  ;;  %s200_s25 = scalar_lea.vmem [#allocation6], %s629_s6 }
  0x38   : > { %s1300_s27 = scalar_select %p1134_p4, 1, 0 }
  0x39   : > { %s207_s28 = sshll.u32 %s200_s25, 4  ;;  %p1143_p2 = pnand %p682_p6, %p89_p1  ;;  %s208_s28 = int_to_ptr.vmem [resolvable:$true] %s207_s28 }
  0x3a   : > { %s197_s11 = scalar_lea.sflag [#allocation7], %s196_s4  ;;  %s821_s29 = scalar_lea.vmem %s208_s28, 512 }
  0x3b   : > { %p810_p7 = pneg %p1143_p2  ;;  %p822_p12 = scmp.ne.s32.totalorder %s208_s28, %s821_s29 }
  0x3c   : > { %s966_s0 = smov [#allocation6]  }
  0x3d   : > { %p824_p13 = pnand %p822_p12, %p810_p7  ;;  %s826_s24 = sshll.u32 %s966_s0, 4  ;;  %s827_s24 = int_to_ptr.vmem [resolvable:$false] %s826_s24 }
  0x3e   : > { %s828_s26 = scalar_lea.vmem %s827_s24, 1024  ;;  %p829_p8 = scmp.lt.s32.totalorder %s208_s28, %s827_s24 }
  0x3f   : > { %p825_p9 = pneg %p824_p13  ;;  %p830_p5 = scmp.lt.s32.totalorder %s828_s26, %s821_s29 }
  0x41   : > { %p831_p4 = por %p830_p5, %p829_p8 }
  0x43   : > { %p832_p6 = pnand %p831_p4, %p825_p9 }
  0x45   : > { %835 = shalt.err (!%p832_p6)
}
  0x46   : > { %s1302_s6 = smov 8   ;;  %s1303_s5 = smov 128  }
  0x47   : > { %677 = dma.hbm_to_vmem [thread:$0]  (!%p1143_p2), %s206_s3, 512, %s208_s28, %s197_s11, %s1303_s5, %s1303_s5, %s1302_s6  }
  0x48   : > { %225 = sbr.rel (%p1099_p11) target bundleno = 517 (0x205), region = 32  ;;  %s227_s4 = sand.u32 (!%p1099_p11), 1, %s936_s16  }
  0x49   : > { %s633_s0 = sshll.u32 (!%p1099_p11), %s227_s4, 6  ;;  %s228_s7 = scalar_lea.sflag (!%p1099_p11), [#allocation4], %s227_s4 }
  0x4a   : > { %s1157_s25 = scalar_lea.vmem (!%p1099_p11), [#allocation3], %s633_s0 }
  0x4d   : > { %907 = dma.done.wait (%p1111_p0), %s228_s7, 1024  }
  0x4e   : > { %909 = vsyncadd (%p1111_p0), %s228_s7, 4294966272  ;;  %s1164_s24 = sand.u32 1, %s924_s13  }
  0x4f   : > { %s634_s28 = sshll.u32 %s1164_s24, 5  ;;  %s237_s29 = scalar_lea.sflag [#allocation7], %s1164_s24 }
  0x50   : > { %s1168_s8 = scalar_lea.vmem [#allocation6], %s634_s28 }
  0x51   : > { %911 = dma.done.wait (%p1124_p3), %s237_s29, 512  }
  0x52   : > { %913 = vsyncadd (%p1124_p3), %s237_s29, 4294966784  ;;  %s635_s30 = sshll.u32 %s1164_s24, 3  ;;  %p274_p11 = scmp.lt.s32.totalorder %s948_s19, 1 }
  0x53   : > { %s1183_s6 = scalar_lea.vmem [#allocation8], %s635_s30  ;;  %s1304_s5 = sld [smem:[#allocation12_spill]] }
  0x54   : > { %s1177_s3 = scalar_select %p274_p11, %s948_s19, 1 }
  0x56   : > { %s276_s26 = scalar_lea.vmem %s1280_s2, %s1177_s3 }
  0x59   : > { %p636_p0 = scmp.ne.s32.totalorder %s1304_s5, 0 }
  0x5b   : > { %280 = sbr.rel (%p636_p0) target bundleno = 98 (0x62), region = 44 }
  0x60   : > { %vm281_vm0 = vcmask 261120   ;;  %v967_v0 = vmov 0.0  }
  0x61   : > { %282 = vst.msk [vmem:[#allocation2] sm:$0xff] %vm281_vm0, %v967_v0 }
  0x62 PF: > { %v283_v1 = vld [vmem:[%s1157_s25] sm:$0xff]  ;;  %v284_v2 = vld [vmem:[%s1157_s25 + $0x8] sm:$0xff]  ;;  %v285_v3 = vld [vmem:[%s1157_s25 + $0x10] sm:$0xff]  ;;  %vm292_vm1 = vcmask 261120   ;;  %vm357_vm2 = vcmask 1041409   ;;  %vm359_vm3 = vcmask 1042434  }
  0x63   : > { %v286_v4 = vld [vmem:[%s1157_s25 + $0x18] sm:$0xff]  ;;  %v287_v5 = vld [vmem:[%s1157_s25 + $0x20] sm:$0xff]  ;;  %v288_v6 = vld [vmem:[%s1157_s25 + $0x28] sm:$0xff]  ;;  %v293_v7 = vsel %vm292_vm1, %v283_v1, 0.0  ;;  %v300_v8 = vsel %vm292_vm1, %v284_v2, 0.0  ;;  %v307_v9 = vsel %vm292_vm1, %v285_v3, 0.0 }
  0x64   : > { %v289_v10 = vld [vmem:[%s1157_s25 + $0x30] sm:$0xff]  ;;  %v290_v11 = vld [vmem:[%s1157_s25 + $0x38] sm:$0xff]  ;;  %v294_v12 = vrot.slane %v293_v7, 4  ;;  %v301_v13 = vrot.slane %v300_v8, 4  ;;  %v308_v14 = vrot.slane %v307_v9, 4  ;;  %v314_v15 = vsel %vm292_vm1, %v286_v4, 0.0 }
  0x65   : > { %v321_v16 = vsel %vm292_vm1, %v287_v5, 0.0  ;;  %v328_v17 = vsel %vm292_vm1, %v288_v6, 0.0  ;;  %v335_v18 = vsel %vm292_vm1, %v289_v10, 0.0  ;;  %v315_v22 = vrot.slane %v314_v15, 4  ;;  %s1305_s20 = sld [smem:[#allocation12_spill]] }
  0x66   : > { %v295_v19 = vadd.f32 %v294_v12, %v293_v7  ;;  %v302_v20 = vadd.f32 %v301_v13, %v300_v8  ;;  %v309_v21 = vadd.f32 %v308_v14, %v307_v9  ;;  %v322_v23 = vrot.slane %v321_v16, 4 }
  0x67   : > { %v329_v24 = vrot.slane %v328_v17, 4  ;;  %v336_v25 = vrot.slane %v335_v18, 4  ;;  %v342_v26 = vsel %vm292_vm1, %v290_v11, 0.0  ;;  %v316_v30 = vadd.f32 %v315_v22, %v314_v15 }
  0x68   : > { %v296_v27 = vrot.slane %v295_v19, 2  ;;  %v303_v28 = vrot.slane %v302_v20, 2  ;;  %v310_v29 = vrot.slane %v309_v21, 2  ;;  %v323_v31 = vadd.f32 %v322_v23, %v321_v16  ;;  %v291_v5 = vld [vmem:[#allocation2] sm:$0xff] }
  0x69   : > { %v330_v32 = vadd.f32 %v329_v24, %v328_v17  ;;  %v337_v33 = vadd.f32 %v336_v25, %v335_v18  ;;  %v343_v34 = vrot.slane %v342_v26, 4  ;;  %v317_v38 = vrot.slane %v316_v30, 2 }
  0x6a   : > { %v297_v35 = vadd.f32 %v296_v27, %v295_v19  ;;  %v304_v36 = vadd.f32 %v303_v28, %v302_v20  ;;  %v311_v37 = vadd.f32 %v310_v29, %v309_v21  ;;  %v324_v39 = vrot.slane %v323_v31, 2 }
  0x6b   : > { %v331_v40 = vrot.slane %v330_v32, 2  ;;  %v338_v41 = vrot.slane %v337_v33, 2  ;;  %v344_v42 = vadd.f32 %v343_v34, %v342_v26  ;;  %v318_v46 = vadd.f32 %v317_v38, %v316_v30  ;;  %p637_p1 = scmp.ne.s32.totalorder %s1305_s20, 1 }
  0x6c   : > { %v298_v43 = vrot.slane %v297_v35, 1  ;;  %v305_v44 = vrot.slane %v304_v36, 1  ;;  %v312_v45 = vrot.slane %v311_v37, 1  ;;  %v325_v47 = vadd.f32 %v324_v39, %v323_v31 }
  0x6d   : > { %v332_v48 = vadd.f32 %v331_v40, %v330_v32  ;;  %v339_v49 = vadd.f32 %v338_v41, %v337_v33  ;;  %v345_v50 = vrot.slane %v344_v42, 2  ;;  %v319_v54 = vrot.slane %v318_v46, 1 }
  0x6e   : > { %v299_v51 = vadd.f32 %v298_v43, %v297_v35  ;;  %v306_v52 = vadd.f32 %v305_v44, %v304_v36  ;;  %v313_v53 = vadd.f32 %v312_v45, %v311_v37  ;;  %v326_v55 = vrot.slane %v325_v47, 1 }
  0x6f   : > { %v333_v56 = vrot.slane %v332_v48, 1  ;;  %v340_v57 = vrot.slane %v339_v49, 1  ;;  %v346_v58 = vadd.f32 %v345_v50, %v344_v42  ;;  %v320_v59 = vadd.f32 %v319_v54, %v318_v46 }
  0x70   : > { %v358_v60 = vsel %vm357_vm2, %v306_v52, %v299_v51  ;;  %vm361_vm4 = vcmask 1043459   ;;  %v327_v61 = vadd.f32 %v326_v55, %v325_v47  ;;  %vm363_vm5 = vcmask 1044484  }
  0x71   : > { %v334_v62 = vadd.f32 %v333_v56, %v332_v48  ;;  %v347_v63 = vrot.slane %v346_v58, 1  ;;  %v341_v0 = vadd.f32 %v340_v57, %v339_v49  ;;  %v360_v1 = vsel %vm359_vm3, %v313_v53, %v358_v60 }
  0x72   : > { %vm365_vm6 = vcmask 1045509   ;;  %v362_v3 = vsel %vm361_vm4, %v320_v59, %v360_v1  ;;  %vm367_vm7 = vcmask 1046534   ;;  %vm369_vm8 = vcmask 1047559  }
  0x73   : > { %v348_v2 = vadd.f32 %v347_v63, %v346_v58  ;;  %v364_v4 = vsel %vm363_vm5, %v327_v61, %v362_v3 }
  0x74   : > { %v366_v6 = vsel %vm365_vm6, %v334_v62, %v364_v4 }
  0x75   : > { %v368_v7 = vsel %vm367_vm7, %v341_v0, %v366_v6  ;;  %377 = sbr.rel (%p637_p1) target bundleno = 494 (0x1ee), region = 48 }
  0x76   : > { %v370_v8 = vsel %vm369_vm8, %v348_v2, %v368_v7 }
  0x77   : > { %v372_v9 = vadd.f32 %v370_v8, %v291_v5 }
  0x79   : > { %373 = vst.msk [vmem:[#allocation2] sm:$0xff] %vm292_vm1, %v372_v9 }
  0x7a   : > { %v383_v10 = vld [vmem:[%s1168_s8 + $0x18] sm:$0xff]  ;;  %v968_v11 = vmov 0.0   ;;  %vm969_vm9 = vmmov 0   ;;  %v382_v12 = vld [vmem:[%s1168_s8 + $0x10] sm:$0xff]  ;;  %v381_v13 = vld [vmem:[%s1168_s8 + $0x8] sm:$0xff] }
  0x7b   : > { %654 = vmatprep.subr.mxu0 %v968_v11  ;;  %662 = vmatprep.mubr.msk.f32.mxu0 %vm969_vm9, %v968_v11  ;;  %v380_v15 = vld [vmem:[%s1168_s8] sm:$0xff]  ;;  %v638_v17 = vld [vmem:[%s276_s26] ss:$0 sm:$0xff] }
  0x7c   : > { %655 = vmatpush3.xpose.msk.msra.mxu0 %vm292_vm1, %v383_v10 }
  0x7d   : > { %656 = vmatprep.subr.mxu0 %v968_v11 }
  0x80   : > { %657 = vmatpush3.xpose.msk.msra.mxu0 %vm292_vm1, %v382_v12  ;;  %v378_v14 = vld [vmem:[#allocation2] sm:$0xff] }
  0x81   : > { %658 = vmatprep.subr.mxu0 %v968_v11  ;;  %v379_v16 = vmul.f32 0.0625, %v378_v14 }
  0x84   : > { %659 = vmatpush3.xpose.msk.msra.mxu0 %vm292_vm1, %v381_v13 }
  0x85   : > { %660 = vmatprep.subr.mxu0 %v968_v11 }
  0x88   : > { %661 = vmatpush3.xpose.msk.msra.mxu0 %vm292_vm1, %v380_v15 }
  0x8b   : > { %663 = vmatmul.mubr.msk.f32.vlgmr.msra.gmra.mxu0 %vm292_vm1, %v379_v16 }
 0x14b   : > { %v472_v18 = vpop.f32.mrf.mxu0 }
 0x14c   : > { %v473_v19 = vadd.f32 %v638_v17, %v472_v18 }
 0x14d   : > { %v664_v20 = vpop.f32.mrf.mxu0 }
 0x14e   : > { %v476_v21 = vmul.f32 %v473_v19, %v473_v19 }
 0x150   : > { %v477_v22 = vsel %vm292_vm1, %v476_v21, 0.0 }
 0x151   : > { %478 = vadd.xlane.f32.xlu0 %v477_v22 }
 0x1da   : > { %v479_v23 = vpop.xlane.xlu0 %478 }
 0x1db   : > { %v480_v24 = vadd.f32 1e-12, %v479_v23 }
 0x1dd   : > { %778 = vrsqrt.f32 %v480_v24 }
 0x1ea   : > { %v779_v25 = vpop.eup %778 }
 0x1eb   : > { %v482_v26 = vmul.f32 %v779_v25, %v473_v19 }
 0x1ed   : > { %483 = vst.msk [vmem:[%s1183_s6] sm:$0xff] %vm292_vm1, %v482_v26 }
 0x1ee PF: > { %s645_s7 = sshll.u32 %s948_s19, 7  ;;  %s1306_s29 = sld [smem:[#allocation16_spill]] }
 0x1ef   : > { %s499_s30 = sshll.u32 %s1183_s6, 4  ;;  %s485_s3 = scalar_lea.sflag [#allocation5], %s1164_s24  ;;  %s500_s30 = int_to_ptr.vmem [resolvable:$true] %s499_s30 }
 0x1f0   : > { %s836_s9 = scalar_lea.vmem %s500_s30, 128  ;;  %s970_s11 = smov [#allocation8]  }
 0x1f1   : > { %p837_p3 = scmp.ne.s32.totalorder %s500_s30, %s836_s9  ;;  %s840_s26 = sshll.u32 %s970_s11, 4  ;;  %s841_s26 = int_to_ptr.vmem [resolvable:$false] %s840_s26 }
 0x1f2   : > { %s842_s5 = scalar_lea.vmem %s841_s26, 256  ;;  %p843_p7 = scmp.lt.s32.totalorder %s500_s30, %s841_s26 }
 0x1f3   : > { %p838_p4 = pnand %p837_p3, %p1130_p10  ;;  %p844_p12 = scmp.lt.s32.totalorder %s842_s5, %s836_s9 }
 0x1f4   : > { %s497_s8 = scalar_lea.hbm %s1306_s29, %s645_s7 }
 0x1f5   : > { %p839_p2 = pneg %p838_p4  ;;  %p845_p13 = por %p844_p12, %p843_p7 }
 0x1f7   : > { %p846_p9 = pnand %p845_p13, %p839_p2 }
 0x1f9   : > { %849 = shalt.err (!%p846_p9)
}
 0x1fa   : > { %s850_s19 = scalar_lea.hbm %s497_s8, 128  ;;  %s854_s20 = scalar_lea.hbm %s1306_s29, 256 }
 0x1fb   : > { %p851_p8 = scmp.ne.s32.totalorder %s497_s8, %s850_s19  ;;  %p855_p11 = scmp.lt.s32.totalorder %s497_s8, %s1306_s29 }
 0x1fc   : > { %p856_p0 = scmp.lt.s32.totalorder %s854_s20, %s850_s19 }
 0x1fd   : > { %p852_p5 = pnand %p851_p8, %p1130_p10 }
 0x1fe   : > { %p857_p1 = por %p856_p0, %p855_p11 }
 0x1ff   : > { %p853_p6 = pneg %p852_p5 }
 0x201   : > { %p858_p3 = pnand %p857_p1, %p853_p6 }
 0x203   : > { %861 = shalt.err (!%p858_p3)
}
 0x204   : > { %669 = dma.vmem_to_hbm [thread:$0]  (%p1130_p10), %s500_s30, 128, %s497_s8, %s485_s3  }
 0x205 PF: > { %p683_p4 = scmp.ge.s32.totalorder %s960_s22, 2  ;;  %s511_s7 = sand.u32 1, %s920_s12  }
 0x206   : > { %p1307_p2 = scmp.ne.s32.totalorder %s1300_s27, 0  ;;  %s512_s25 = scalar_lea.sflag [#allocation5], %s511_s7 }
 0x208   : > { %p679_p7 = pnand %p683_p4, %p1307_p2 }
 0x20a   : > { %p680_p12 = pneg %p679_p7 }
 0x20c   : > { %915 = dma.done.wait (%p680_p12), %s512_s25, 128  }
 0x20d   : > { %917 = vsyncadd (%p680_p12), %s512_s25, 4294967168  ;;  %s22_s22 = sadd.s32 1, %s960_s22   ;;  %s1308_s28 = sld [smem:[#allocation13_spill]] }
 0x20e   : > { %p19_p13 = scmp.ge.s32.totalorder %s22_s22, 6   ;;  %s1309_s8 = sld [smem:[#allocation14_spill]] }
 0x20f   : > { %s1310_s12 = smov %s924_s13  ;;  %s1311_s13 = smov %s928_s14 }
 0x210   : > { %s1312_s14 = smov %s1120_s18  ;;  %s1313_s15 = smov %s936_s16 }
 0x211   : > { %s1314_s16 = smov %s940_s17  ;;  %s1315_s17 = smov %s1078_s10 }
 0x212   : > { %s1317_s19 = smov %s956_s21  ;;  %s1318_s20 = smov %s1321_s23 }
 0x213   : > { %s1316_s18 = smov %s1308_s28  ;;  %21 = sbr.rel (!%p19_p13) target bundleno = 14 (0xe), region = 101 }
 0x214   : > { %s1319_s21 = smov %s1309_s8 }
 0x218   :  { %517 = vsyncpa [#allocation4], 1 }
 0x219   :  { %519 = vsyncpa [#allocation4 + $0x1], 1 }
 0x21a   :  { %520 = vsyncpa [#allocation7], 1 }
 0x21b   :  { %522 = vsyncpa [#allocation7 + $0x1], 1 }
 0x21c   :  { %523 = vsyncpa [#allocation5], 1 }
 0x21d   :  { %525 = vsyncpa [#allocation5 + $0x1], 1 }

</bundles_post_ra>
